<compile_context>
chip_gen: v6e
topology: v6e:2x2x1
jax: 0.10.0
libtpu: 0.0.40
codegen_flags: <defaults>
</compile_context>

<pallas_src>
import jax
import jax.numpy as jnp
from jax.experimental import pallas as pl
from jax.experimental.pallas import tpu as pltpu


def _round_up(n, m):
    return ((n + m - 1) // m) * m


def _make_generator_kernel(output_activation):
    def _generator_kernel(xt_ref, w1_ref, b1_ref, w2_ref, b2_ref, w3_ref, b3_ref, ot_ref):
        # All dots are [features, K] @ [K, tile_b] -> [features, tile_b]; tile_b is a
        # multiple of 128 (or the full padded batch), so results + store are lane-dense.
        h1 = jnp.dot(w1_ref[...], xt_ref[...], preferred_element_type=jnp.float32)
        h1 = jnp.tanh(h1 + b1_ref[...])                    # bias [32,1] broadcasts over lanes
        h2 = jnp.dot(w2_ref[...], h1.astype(w2_ref.dtype),
                     preferred_element_type=jnp.float32)
        h2 = jnp.tanh(h2 + b2_ref[...])
        out = jnp.dot(w3_ref[...], h2.astype(w3_ref.dtype),
                      preferred_element_type=jnp.float32)
        out = out + b3_ref[...]
        if output_activation == "tanh":
            out = jnp.tanh(out)
        elif output_activation == "sigmoid":
            out = jax.nn.sigmoid(out)
        ot_ref[...] = out.astype(ot_ref.dtype)

    return _generator_kernel


def classic_generator_forward(x, params, *, tile_b=2048, use_bf16=False,
                              output_activation=None):
    """x: [B, latent_dim]. params: PyTorch-layout w{1,2,3}: [out, in], b{1,2,3}: [out, 1]."""
    B, latent_dim = x.shape
    h1_dim = params["w1"].shape[0]
    h2_dim = params["w2"].shape[0]
    out_dim = params["w3"].shape[0]

    # ---- batch tiling: lane-dense tiles, no divisibility requirement on B ----
    tb = min(_round_up(max(tile_b, 128), 128), _round_up(B, 128))
    if tb > 128 and _round_up(B, tb) // tb == 1:
        # Split into >=2 parallel grid steps so v7x's two TensorCores both get work.
        tb = _round_up(pl.cdiv(tb, 2), 128)
    B_pad = _round_up(B, tb)
    grid = (B_pad // tb,)

    # Transpose once in the wrapper (layout plumbing) and zero-pad the batch.
    xt = x.T
    if B_pad != B:
        xt = jnp.pad(xt, ((0, 0), (0, B_pad - B)))

    in_dtype = jnp.bfloat16 if use_bf16 else x.dtype
    xt = xt.astype(in_dtype)
    w1 = params["w1"].astype(in_dtype)
    w2 = params["w2"].astype(in_dtype)
    w3 = params["w3"].astype(in_dtype)
    b1 = params["b1"].astype(jnp.float32)
    b2 = params["b2"].astype(jnp.float32)
    b3 = params["b3"].astype(jnp.float32)

    # Constant index_maps => weight/bias blocks are DMA'd once and stay resident.
    const = lambda shape: pl.BlockSpec(shape, lambda i: (0, 0))

    out_t = pl.pallas_call(
        _make_generator_kernel(output_activation),
        out_shape=jax.ShapeDtypeStruct((out_dim, B_pad), x.dtype),
        grid_spec=pl.GridSpec(
            grid=grid,
            in_specs=[
                pl.BlockSpec((latent_dim, tb), lambda i: (0, i)),  # x^T tile
                const((h1_dim, latent_dim)),                       # w1
                const((h1_dim, 1)),                                # b1
                const((h2_dim, h1_dim)),                           # w2
                const((h2_dim, 1)),                                # b2
                const((out_dim, h2_dim)),                          # w3
                const((out_dim, 1)),                               # b3
            ],
            out_specs=pl.BlockSpec((out_dim, tb), lambda i: (0, i)),
        ),
        compiler_params=pltpu.CompilerParams(
            dimension_semantics=("parallel",),
        ),
    )(xt, w1, b1, w2, b2, w3, b3)

    return out_t[:, :B].T


def init_params(key, latent_dim, output_dim):
    """Deterministic init; PyTorch-native layout: w [out, in], b [out, 1]."""
    ks = jax.random.split(key, 6)

    def lin(kw, kb, fan_in, fan_out):
        bound = 1.0 / jnp.sqrt(fan_in)
        w = jax.random.uniform(kw, (fan_out, fan_in), jnp.float32, -bound, bound)
        b = jax.random.uniform(kb, (fan_out, 1), jnp.float32, -bound, bound)
        return w, b

    w1, b1 = lin(ks[0], ks[1], latent_dim, 32)
    w2, b2 = lin(ks[2], ks[3], 32, 16)
    w3, b3 = lin(ks[4], ks[5], 16, output_dim)
    return {"w1": w1, "b1": b1, "w2": w2, "b2": b2, "w3": w3, "b3": b3}


def reference_forward(x, p, output_activation=None):
    h = jnp.tanh(x @ p["w1"].T + p["b1"][:, 0])
    h = jnp.tanh(h @ p["w2"].T + p["b2"][:, 0])
    out = h @ p["w3"].T + p["b3"][:, 0]
    if output_activation == "tanh":
        out = jnp.tanh(out)
    elif output_activation == "sigmoid":
        out = jax.nn.sigmoid(out)
    return out


if __name__ == "__main__":
    key = jax.random.PRNGKey(0)
    k_param, k_x1, k_x2 = jax.random.split(key, 3)

    latent_dim, output_dim = 16, 8
    params = init_params(k_param, latent_dim, output_dim)

    # Primary small-shape check (batch=8 -> padded to one 128-lane tile).
    x_small = jax.random.normal(k_x1, (8, latent_dim), jnp.float32)
    out_small = jax.block_until_ready(classic_generator_forward(x_small, params))
    ref_small = reference_forward(x_small, params)
    assert out_small.shape == (8, output_dim)
    assert jnp.allclose(out_small, ref_small, atol=1e-5, rtol=1e-5), "mismatch (small batch)"

    # Secondary check: non-multiple batch -> padding path + >=2 parallel grid steps.
    x_big = jax.random.normal(k_x2, (300, latent_dim), jnp.float32)
    out_big = jax.block_until_ready(classic_generator_forward(x_big, params))
    ref_big = reference_forward(x_big, params)
    assert out_big.shape == (300, output_dim)
    assert jnp.allclose(out_big, ref_big, atol=1e-5, rtol=1e-5), "mismatch (padded batch)"

    # Fused output-activation path (module's optional output_activation arg).
    out_act = jax.block_until_ready(
        classic_generator_forward(x_small, params, output_activation="tanh"))
    ref_act = reference_forward(x_small, params, output_activation="tanh")
    assert jnp.allclose(out_act, ref_act, atol=1e-5, rtol=1e-5), "mismatch (output activation)"

    print("KERNEL_OK")
</pallas_src>

<mosaic_0001>
module attributes {stable_mosaic.version = 11 : i64} {
  func.func @_generator_kernel(%arg0: i32, %arg1: memref<16x128xf32, #tpu.memory_space<vmem>>, %arg2: memref<32x16xf32, #tpu.memory_space<vmem>>, %arg3: memref<32x1xf32, #tpu.memory_space<vmem>>, %arg4: memref<16x32xf32, #tpu.memory_space<vmem>>, %arg5: memref<16x1xf32, #tpu.memory_space<vmem>>, %arg6: memref<8x16xf32, #tpu.memory_space<vmem>>, %arg7: memref<8x1xf32, #tpu.memory_space<vmem>>, %arg8: memref<8x128xf32, #tpu.memory_space<vmem>>) attributes {dimension_semantics = [#tpu.dimension_semantics<parallel>], iteration_bounds = array<i64: 1>, scalar_prefetch = 0 : i64, scratch_operands = 0 : i64, tpu.core_type = #tpu.core_type<tc>, window_params = [{transform_indices = @transform_0, window_bounds = array<i64: 16, 128>}, {pipeline_mode = #tpu.pipeline_mode<synchronous>, transform_indices = @transform_1, window_bounds = array<i64: 32, 16>}, {pipeline_mode = #tpu.pipeline_mode<synchronous>, transform_indices = @transform_2, window_bounds = array<i64: 32, 1>}, {pipeline_mode = #tpu.pipeline_mode<synchronous>, transform_indices = @transform_3, window_bounds = array<i64: 16, 32>}, {pipeline_mode = #tpu.pipeline_mode<synchronous>, transform_indices = @transform_4, window_bounds = array<i64: 16, 1>}, {pipeline_mode = #tpu.pipeline_mode<synchronous>, transform_indices = @transform_5, window_bounds = array<i64: 8, 16>}, {pipeline_mode = #tpu.pipeline_mode<synchronous>, transform_indices = @transform_6, window_bounds = array<i64: 8, 1>}, {transform_indices = @transform_7, window_bounds = array<i64: 8, 128>}]} {
    %c0 = arith.constant 0 : index
    %c0_0 = arith.constant 0 : index
    %0 = vector.load %arg2[%c0, %c0_0] : memref<32x16xf32, #tpu.memory_space<vmem>>, vector<32x16xf32>
    %c0_1 = arith.constant 0 : index
    %c0_2 = arith.constant 0 : index
    %1 = vector.load %arg1[%c0_1, %c0_2] : memref<16x128xf32, #tpu.memory_space<vmem>>, vector<16x128xf32>
    %cst = arith.constant dense<0.000000e+00> : vector<32x128xf32>
    %2 = tpu.matmul %0, %1, %cst {dimension_numbers = #tpu.dot_dimension_numbers<[1], [0], [0], [1], [0, 0, 1, 1], [], []>} : vector<32x16xf32>, vector<16x128xf32>, vector<32x128xf32> -> vector<32x128xf32>
    %c0_3 = arith.constant 0 : index
    %c0_4 = arith.constant 0 : index
    %3 = vector.load %arg3[%c0_3, %c0_4] : memref<32x1xf32, #tpu.memory_space<vmem>>, vector<32x1xf32>
    %4 = vector.broadcast %3 : vector<32x1xf32> to vector<32x128xf32>
    %5 = arith.addf %2, %4 : vector<32x128xf32>
    %6 = math.tanh %5 : vector<32x128xf32>
    %c0_5 = arith.constant 0 : index
    %c0_6 = arith.constant 0 : index
    %7 = vector.load %arg4[%c0_5, %c0_6] : memref<16x32xf32, #tpu.memory_space<vmem>>, vector<16x32xf32>
    %cst_7 = arith.constant dense<0.000000e+00> : vector<16x128xf32>
    %8 = tpu.matmul %7, %6, %cst_7 {dimension_numbers = #tpu.dot_dimension_numbers<[1], [0], [0], [1], [0, 0, 1, 1], [], []>} : vector<16x32xf32>, vector<32x128xf32>, vector<16x128xf32> -> vector<16x128xf32>
    %c0_8 = arith.constant 0 : index
    %c0_9 = arith.constant 0 : index
    %9 = vector.load %arg5[%c0_8, %c0_9] : memref<16x1xf32, #tpu.memory_space<vmem>>, vector<16x1xf32>
    %10 = vector.broadcast %9 : vector<16x1xf32> to vector<16x128xf32>
    %11 = arith.addf %8, %10 : vector<16x128xf32>
    %12 = math.tanh %11 : vector<16x128xf32>
    %c0_10 = arith.constant 0 : index
    %c0_11 = arith.constant 0 : index
    %13 = vector.load %arg6[%c0_10, %c0_11] : memref<8x16xf32, #tpu.memory_space<vmem>>, vector<8x16xf32>
    %cst_12 = arith.constant dense<0.000000e+00> : vector<8x128xf32>
    %14 = tpu.matmul %13, %12, %cst_12 {dimension_numbers = #tpu.dot_dimension_numbers<[1], [0], [0], [1], [0, 0, 1, 1], [], []>} : vector<8x16xf32>, vector<16x128xf32>, vector<8x128xf32> -> vector<8x128xf32>
    %c0_13 = arith.constant 0 : index
    %c0_14 = arith.constant 0 : index
    %15 = vector.load %arg7[%c0_13, %c0_14] : memref<8x1xf32, #tpu.memory_space<vmem>>, vector<8x1xf32>
    %16 = vector.broadcast %15 : vector<8x1xf32> to vector<8x128xf32>
    %17 = arith.addf %14, %16 : vector<8x128xf32>
    %c0_15 = arith.constant 0 : index
    %c0_16 = arith.constant 0 : index
    %18 = vector.load %arg8[%c0_15, %c0_16] : memref<8x128xf32, #tpu.memory_space<vmem>>, vector<8x128xf32>
    tpu.vector_store %arg8[%c0_15, %c0_16], %17 {strides = array<i32>} : memref<8x128xf32, #tpu.memory_space<vmem>>, vector<8x128xf32>,
    return
  }
  func.func @transform_0(%arg0: i32) -> (i32, i32) {
    %c0_i32 = arith.constant 0 : i32
    %c0_i32_0 = arith.constant 0 : i32
    return %c0_i32, %arg0 : i32, i32
  }
  func.func @transform_1(%arg0: i32) -> (i32, i32) {
    %c0_i32 = arith.constant 0 : i32
    %c0_i32_0 = arith.constant 0 : i32
    %c0_i32_1 = arith.constant 0 : i32
    return %c0_i32, %c0_i32_0 : i32, i32
  }
  func.func @transform_2(%arg0: i32) -> (i32, i32) {
    %c0_i32 = arith.constant 0 : i32
    %c0_i32_0 = arith.constant 0 : i32
    %c0_i32_1 = arith.constant 0 : i32
    return %c0_i32, %c0_i32_0 : i32, i32
  }
  func.func @transform_3(%arg0: i32) -> (i32, i32) {
    %c0_i32 = arith.constant 0 : i32
    %c0_i32_0 = arith.constant 0 : i32
    %c0_i32_1 = arith.constant 0 : i32
    return %c0_i32, %c0_i32_0 : i32, i32
  }
  func.func @transform_4(%arg0: i32) -> (i32, i32) {
    %c0_i32 = arith.constant 0 : i32
    %c0_i32_0 = arith.constant 0 : i32
    %c0_i32_1 = arith.constant 0 : i32
    return %c0_i32, %c0_i32_0 : i32, i32
  }
  func.func @transform_5(%arg0: i32) -> (i32, i32) {
    %c0_i32 = arith.constant 0 : i32
    %c0_i32_0 = arith.constant 0 : i32
    %c0_i32_1 = arith.constant 0 : i32
    return %c0_i32, %c0_i32_0 : i32, i32
  }
  func.func @transform_6(%arg0: i32) -> (i32, i32) {
    %c0_i32 = arith.constant 0 : i32
    %c0_i32_0 = arith.constant 0 : i32
    %c0_i32_1 = arith.constant 0 : i32
    return %c0_i32, %c0_i32_0 : i32, i32
  }
  func.func @transform_7(%arg0: i32) -> (i32, i32) {
    %c0_i32 = arith.constant 0 : i32
    %c0_i32_0 = arith.constant 0 : i32
    return %c0_i32, %arg0 : i32, i32
  }
}

</mosaic_0001>

<bundles_post_ra>
// kernel: tpu_custom_call.1
= control target key start
LH: loop header
LB: loop body
LE: loop exit
PB: predicated region body
PF: predicated region fallthrough
CT: control target
= control target key end

     0   :  { %vm57_vm0 = vcmask 130048   ;;  %v442_v4 = vmov 0   ;;  %s544_s0 = inlined_call_operand.vmem [shape: f32[16,128], index: 0, kind: input, shape index: {}]   ;;  %s545_s1 = inlined_call_operand.vmem [shape: f32[32,16], index: 1, kind: input, shape index: {}]   ;;  %s546_s2 = inlined_call_operand.vmem [shape: f32[32,1], index: 2, kind: input, shape index: {}]   ;;  %s547_s3 = inlined_call_operand.vmem [shape: f32[16,32], index: 3, kind: input, shape index: {}]   ;;  %s548_s4 = inlined_call_operand.vmem [shape: f32[16,1], index: 4, kind: input, shape index: {}]   ;;  %s549_s5 = inlined_call_operand.vmem [shape: f32[8,16], index: 5, kind: input, shape index: {}]   ;;  %s550_s6 = inlined_call_operand.vmem [shape: f32[8,1], index: 6, kind: input, shape index: {}]   ;;  %s551_s7 = inlined_call_operand.hbm [shape: f32[8,128], index: 7, kind: output, shape index: {}]  }
   0x1   :  { %v32_v0 = vld [vmem:[%s544_s0 + $0x8] sm:$0xff]  ;;  %v31_v1 = vld [vmem:[%s544_s0] sm:$0xff]  ;;  %406 = vset.pattern.permute.xlu0 %v442_v4  ;;  %v36_v5 = vld [vmem:[%s546_s2 + $0x18] sm:$0xff]  ;;  %407 = vset.pattern.permute.xlu1 %v442_v4 }
   0x2   :  { %v27_v2 = vld [vmem:[%s545_s1] sm:$0xff]  ;;  %374 = vmatprep.subr.mxu0 %v32_v0  ;;  %v28_v3 = vld [vmem:[%s545_s1 + $0x8] sm:$0xff]  ;;  %v29_v6 = vld [vmem:[%s545_s1 + $0x10] sm:$0xff]  ;;  %54 = vperm.xlu0 %406, %v36_v5  }
   0x3   :  { %378 = vmatprep.mubr.msk.f32.mxu0 %vm57_vm0, %v27_v2  ;;  %375 = vmatpush3.msra.mxu0 %v32_v0  ;;  %v34_v7 = vld [vmem:[%s546_s2 + $0x8] sm:$0xff]  ;;  %v35_v8 = vld [vmem:[%s546_s2 + $0x10] sm:$0xff] }
   0x4   :  { %376 = vmatprep.subr.mxu0 %v31_v1 }
   0x5   :  { %377 = vmatpush3.msra.mxu0 %v31_v1 }
   0x6   :  { %12 = vsyncpa [#allocation3], 0  ;;  %379 = vmatmul.mubr.msk.f32.vlgmr.msra.gmra.mxu0 %vm57_vm0, %v28_v3  ;;  %44 = vperm.xlu1 %407, %v34_v7   ;;  %v30_v9 = vld [vmem:[%s545_s1 + $0x18] sm:$0xff]  ;;  %v33_v10 = vld [vmem:[%s546_s2] sm:$0xff]  ;;  %vm173_vm1 = vcmask 261120   ;;  %v443_v32 = vmov 0.0  }
   0x7   :  { %381 = vmatprep.mubr.msk.f32.mxu0 %vm57_vm0, %v29_v6  ;;  %49 = vperm.xlu0 %406, %v35_v8   ;;  %v162_v11 = vld [vmem:[%s548_s4 + $0x8] sm:$0xff]  ;;  %v161_v12 = vld [vmem:[%s548_s4] sm:$0xff]  ;;  %vm444_vm2 = vmmov 0   ;;  %s445_s27 = smov [#allocation2]  }
   0x8   :  { %v258_v13 = vld [vmem:[%s550_s6] sm:$0xff]  ;;  %v160_v31 = vld [vmem:[%s547_s3 + $0x8] sm:$0xff]  ;;  %395 = vmatprep.subr.mxu0 %v443_v32  ;;  %s344_s28 = sshll.u32 %s445_s27, 4  ;;  %s345_s28 = int_to_ptr.vmem [resolvable:$true] %s344_s28 }
   0x9   :  { %v159_v14 = vld [vmem:[%s547_s3] sm:$0xff]  ;;  %s420_s29 = scalar_lea.vmem %s345_s28, 128  ;;  %p425_p1 = scmp.lt.s32.totalorder %s345_s28, %s345_s28 }
   0xa   :  { %382 = vmatmul.mubr.msk.f32.gmra.mxu0 %vm57_vm0, %v30_v9  ;;  %39 = vperm.xlu1 %407, %v33_v10   ;;  %v257_v40 = vld [vmem:[%s549_s5] sm:$0xff]  ;;  %p421_p0 = scmp.ne.s32.totalorder %s345_s28, %s420_s29  ;;  %p426_p2 = scmp.lt.s32.totalorder %s420_s29, %s420_s29 }
   0xb   :  { %170 = vperm.xlu0 %406, %v162_v11   ;;  %392 = vmatprep.mubr.msk.f32.mxu1 %vm173_vm1, %v159_v14 }
   0xc   :  { %399 = vmatprep.mubr.msk.f32.mxu0 %vm444_vm2, %v443_v32  ;;  %p427_p3 = por %p426_p2, %p425_p1 }
   0xe   :  { %165 = vperm.xlu1 %407, %v161_v12   ;;  %p428_p4 = pnand %p427_p3, %p421_p0 }
   0xf   :  { %261 = vperm.xlu0 %406, %v258_v13  }
  0x7d   :  { %v55_v15 = vpop.permute.xlu0 %54 }
  0x81   :  { %v45_v16 = vpop.permute.xlu1 %44 }
  0x82   :  { %v50_v20 = vpop.permute.xlu0 %49 }
  0x85   :  { %v40_v22 = vpop.permute.xlu1 %39 }
  0x86   :  { %v171_v33 = vpop.permute.xlu0 %170 }
  0x89   :  { %v166_v36 = vpop.permute.xlu1 %165 }
  0x8a   :  { %v262_v42 = vpop.permute.xlu0 %261 }
  0xc6   :  { %v380_v17 = vpop.f32.mrf.mxu0 }
  0xc7   :  { %v142_v24 = vadd.f32 %v380_v17, %v45_v16 }
  0xc8   :  { %v136_v18 = vpop.f32.mrf.mxu0 }
  0xc9   :  { %v137_v26 = vadd.f32 %v136_v18, %v40_v22 }
  0xca   :  { %v383_v19 = vpop.f32.mrf.mxu0 }
  0xcb   :  { %v152_v21 = vadd.f32 %v383_v19, %v55_v15 }
  0xcc   :  { %v146_v23 = vpop.f32.mrf.mxu0 }
  0xcd   :  { %408 = vtanh.f32 %v152_v21  ;;  %v147_v25 = vadd.f32 %v146_v23, %v50_v20 }
  0xcf   :  { %410 = vtanh.f32 %v147_v25 }
  0xd0   :  { %412 = vtanh.f32 %v142_v24 }
  0xd1   :  { %414 = vtanh.f32 %v137_v26 }
  0xda   :  { %v409_v27 = vpop.eup %408 }
  0xdb   :  { %384 = vmatprep.subr.mxu1 %v409_v27 }
  0xdc   :  { %v411_v28 = vpop.eup %410  ;;  %385 = vmatpush3.msra.mxu1 %v409_v27 }
  0xdd   :  { %386 = vmatprep.subr.mxu1 %v411_v28  ;;  %v413_v29 = vpop.eup %412 }
  0xde   :  { %387 = vmatpush3.msra.mxu1 %v411_v28  ;;  %v415_v30 = vpop.eup %414 }
  0xdf   :  { %388 = vmatprep.subr.mxu1 %v413_v29 }
  0xe0   :  { %389 = vmatpush3.msra.mxu1 %v413_v29 }
  0xe1   :  { %390 = vmatprep.subr.mxu1 %v415_v30 }
  0xe2   :  { %391 = vmatpush3.msra.mxu1 %v415_v30 }
  0xe3   :  { %393 = vmatmul.mubr.msk.f32.vlgmr.msra.gmra.mxu1 %vm173_vm1, %v160_v31 }
 0x1a3   :  { %v394_v34 = vpop.f32.mrf.mxu1 }
 0x1a4   :  { %v252_v35 = vadd.f32 %v394_v34, %v171_v33 }
 0x1a5   :  { %v246_v37 = vpop.f32.mrf.mxu1 }
 0x1a6   :  { %416 = vtanh.f32 %v252_v35  ;;  %v247_v38 = vadd.f32 %v246_v37, %v166_v36 }
 0x1a8   :  { %418 = vtanh.f32 %v247_v38 }
 0x1b3   :  { %v417_v39 = vpop.eup %416 }
 0x1b4   :  { %396 = vmatpush3.msra.mxu0 %v417_v39 }
 0x1b5   :  { %v419_v41 = vpop.eup %418  ;;  %397 = vmatprep.subr.mxu0 %v443_v32 }
 0x1b6   :  { %398 = vmatpush3.msra.mxu0 %v419_v41 }
 0x1b7   :  { %400 = vmatmul.mubr.msk.f32.vlgmr.msra.gmra.mxu0 %vm57_vm0, %v257_v40 }
 0x277   :  { %v333_v43 = vpop.f32.mrf.mxu0 }
 0x278   :  { %v334_v44 = vadd.f32 %v333_v43, %v262_v42 }
 0x279   :  { %v401_v45 = vpop.f32.mrf.mxu0 }
 0x27a   :  { %337 = vst [vmem:[#allocation2] sm:$0xff] %v334_v44 }
 0x27b   :  { %431 = shalt.err (!%p428_p4)
}
 0x27c   :  { %347 = dma.vmem_to_hbm [thread:$0]  %s345_s28, 128, %s551_s7, [#allocation3]  }
 0x27d   :  { %440 = dma.done.wait [#allocation3], 128  }
 0x27e   :  { %441 = vsyncadd [#allocation3], 4294967168 }
 0x27f   :  { %351 = vsyncpa [#allocation3], 1 }

</bundles_post_ra>
